<compile_context>
chip_gen: v7x
topology: tpu7x:2x2x1
jax: 0.10.0
libtpu: 0.0.40
codegen_flags: <defaults>
</compile_context>

<pallas_src>
import jax
import jax.numpy as jnp
from jax.experimental import pallas as pl
from jax.experimental.pallas import tpu as pltpu


def _drs_kernel(x_ref, delta_ref, o_ref):
    # x_ref / o_ref: (tile_rows, H*W) block in VMEM; delta_ref: (1, 1) in SMEM.
    x = x_ref[...]
    # per-row (= per (b, c)) spatial max: XLU cross-lane reduction
    x_max = jnp.max(x, axis=-1, keepdims=True)
    # suppressor: min(x, delta * x_max), broadcast along the lane axis
    delta = delta_ref[0, 0].astype(x.dtype)
    o_ref[...] = jnp.minimum(x, x_max * delta)


def _choose_tile_rows(rows, hw, dtype, target_block_bytes=8 << 20):
    """Pick a dtype-aligned row-tile so each block is ~target_block_bytes."""
    itemsize = jnp.dtype(dtype).itemsize
    # sublane packing of a vreg tile: (8,128) f32, (16,128) bf16, (32,128) int8/fp8
    sublane = {4: 8, 2: 16, 1: 32}.get(itemsize, 8)
    row_bytes = max(1, hw * itemsize)

    tr = (target_block_bytes // row_bytes) // sublane * sublane
    tr = max(sublane, tr)

    rows_ceil = -(-rows // sublane) * sublane
    tr = min(tr, rows_ceil)

    # If everything fits in one block but the tensor is big enough to matter,
    # keep >= 2 grid steps so dimension_semantics=("parallel",) can split the
    # work across both TensorCores (v7x megacore).
    if tr == rows_ceil and rows_ceil >= 2 * sublane and rows_ceil * row_bytes > (4 << 20):
        half = -(-(rows_ceil // 2) // sublane) * sublane
        tr = max(sublane, min(tr, half))

    return int(tr)


def drs(x, delta):
    """DRS forward. x: [B, C, H, W] float array. Returns same shape/dtype."""
    b, c, h, w = x.shape
    rows = b * c
    hw = h * w
    xf = x.reshape(rows, hw)  # free contiguous reshape, no HBM copy

    tile_rows = _choose_tile_rows(rows, hw, x.dtype)
    grid = (pl.cdiv(rows, tile_rows),)

    itemsize = jnp.dtype(x.dtype).itemsize
    block_bytes = tile_rows * hw * itemsize
    # 2x double-buffered input + 2x double-buffered output + headroom,
    # capped so it stays comfortably within v7x's 64 MiB/TC VMEM.
    vmem_limit = int(min(max(4 * block_bytes + (4 << 20), 32 << 20), 48 << 20))

    delta_arr = jnp.asarray(delta, dtype=jnp.float32).reshape(1, 1)

    # TODO(synk): for spatial sizes where H*W is far from a multiple of 128
    # (e.g. 7x7=49) the loads/stores are lane-masked; a layout with B*C on the
    # lane axis would be denser, but only if that layout is already free
    # upstream of this module.
    out = pl.pallas_call(
        _drs_kernel,
        out_shape=jax.ShapeDtypeStruct((rows, hw), x.dtype),
        grid=grid,
        in_specs=[
            pl.BlockSpec((tile_rows, hw), lambda i: (i, 0)),
            pl.BlockSpec(memory_space=pltpu.MemorySpace.SMEM),
        ],
        out_specs=pl.BlockSpec((tile_rows, hw), lambda i: (i, 0)),
        compiler_params=pltpu.CompilerParams(
            dimension_semantics=("parallel",),
            vmem_limit_bytes=vmem_limit,
        ),
    )(xf, delta_arr)

    return out.reshape(b, c, h, w)


if __name__ == "__main__":
    # Deterministic small example consistent with the module's NCHW input.
    key = jax.random.PRNGKey(0)
    b, c, h, w = 2, 4, 16, 16
    x = jax.random.normal(key, (b, c, h, w), dtype=jnp.float32)
    delta = 0.55  # suppression controller

    out = jax.block_until_ready(drs(x, delta))

    # Reference check in plain JAX (mirrors the PyTorch forward exactly).
    x_max = jnp.max(x, axis=(2, 3), keepdims=True)
    ref = jnp.minimum(x, x_max * delta)
    assert out.shape == x.shape and out.dtype == x.dtype
    assert jnp.allclose(out, ref, atol=1e-6, rtol=1e-6)

    print("KERNEL_OK")
</pallas_src>

<mosaic_0001>
module attributes {stable_mosaic.version = 11 : i64} {
  func.func @_drs_kernel(%arg0: i32, %arg1: memref<8x256xf32, #tpu.memory_space<vmem>>, %arg2: memref<1x1xf32, #tpu.memory_space<smem>>, %arg3: memref<8x256xf32, #tpu.memory_space<vmem>>) attributes {dimension_semantics = [#tpu.dimension_semantics<parallel>], iteration_bounds = array<i64: 1>, scalar_prefetch = 0 : i64, scratch_operands = 0 : i64, tpu.core_type = #tpu.core_type<tc>, window_params = [{transform_indices = @transform_0, window_bounds = array<i64: 8, 256>}, {transform_indices = @transform_1, window_bounds = array<i64: 1, 1>}, {transform_indices = @transform_2, window_bounds = array<i64: 8, 256>}]} {
    %c0 = arith.constant 0 : index
    %c0_0 = arith.constant 0 : index
    %0 = vector.load %arg1[%c0, %c0_0] : memref<8x256xf32, #tpu.memory_space<vmem>>, vector<8x256xf32>
    %cst = arith.constant dense<0xFF800000> : vector<8xf32>
    %1 = vector.multi_reduction <maximumf>, %0, %cst [1] : vector<8x256xf32> to vector<8xf32>
    %2 = vector.shape_cast %1 : vector<8xf32> to vector<8x1xf32>
    %c0_1 = arith.constant 0 : index
    %c0_2 = arith.constant 0 : index
    %3 = memref.load %arg2[%c0_1, %c0_2] : memref<1x1xf32, #tpu.memory_space<smem>>
    %4 = vector.broadcast %3 : f32 to vector<8x1xf32>
    %5 = arith.mulf %2, %4 : vector<8x1xf32>
    %6 = vector.broadcast %5 : vector<8x1xf32> to vector<8x256xf32>
    %7 = arith.minimumf %0, %6 : vector<8x256xf32>
    %c0_3 = arith.constant 0 : index
    %c0_4 = arith.constant 0 : index
    %8 = vector.load %arg3[%c0_3, %c0_4] : memref<8x256xf32, #tpu.memory_space<vmem>>, vector<8x256xf32>
    tpu.vector_store %arg3[%c0_3, %c0_4], %7 {strides = array<i32>} : memref<8x256xf32, #tpu.memory_space<vmem>>, vector<8x256xf32>,
    return
  }
  func.func @transform_0(%arg0: i32) -> (i32, i32) {
    %c0_i32 = arith.constant 0 : i32
    %c0_i32_0 = arith.constant 0 : i32
    return %arg0, %c0_i32 : i32, i32
  }
  func.func @transform_1(%arg0: i32) -> (i32, i32) {
    %c0_i32 = arith.constant 0 : i32
    %c0_i32_0 = arith.constant 0 : i32
    %c0_i32_1 = arith.constant 0 : i32
    return %c0_i32, %c0_i32_0 : i32, i32
  }
  func.func @transform_2(%arg0: i32) -> (i32, i32) {
    %c0_i32 = arith.constant 0 : i32
    %c0_i32_0 = arith.constant 0 : i32
    return %arg0, %c0_i32 : i32, i32
  }
}

</mosaic_0001>

<bundles_post_ra>
// kernel: tpu_custom_call.1
= control target key start
LH: loop header
LB: loop body
LE: loop exit
PB: predicated region body
PF: predicated region fallthrough
CT: control target
= control target key end

     0   :  { %8 = vsyncpa [#allocation4], 0  ;;  %s146_s0 = inlined_call_operand.hbm [shape: f32[8,256], index: 0, kind: input, shape index: {}]   ;;  %s147_s1 = inlined_call_operand.<no memory space> [shape: f32[1,1], index: 1, kind: input, shape index: {}]   ;;  %s148_s2 = inlined_call_operand.hbm [shape: f32[8,256], index: 2, kind: output, shape index: {}]  }
   0x1   :  { %9 = vsyncpa [#allocation5], 0  ;;  %s102_s9 = smov [#allocation3]   ;;  %s54_s13 = scalar_lea.hbm %s146_s0, 256 }
   0x2   :  { %s16_s10 = sshll.u32 %s102_s9, 4  ;;  %p55_p0 = scmp.ne.s32.totalorder %s146_s0, %s54_s13  ;;  %s17_s10 = int_to_ptr.vmem [resolvable:$true] %s16_s10 }
   0x3   :  { %p58_p1 = scmp.lt.u32.totalorder %s54_s13, %s146_s0 }
   0x5   :  { %p60_p2 = pnand %p58_p1, %p55_p0 }
   0x7   :  { %63 = shalt.err (!%p60_p2)
}
   0x8   :  { %s64_s18 = scalar_lea.vmem %s17_s10, 256  ;;  %p69_p4 = scmp.lt.s32.totalorder %s17_s10, %s17_s10 }
   0x9   :  { %p65_p3 = scmp.ne.s32.totalorder %s17_s10, %s64_s18  ;;  %p70_p5 = scmp.lt.s32.totalorder %s64_s18, %s64_s18 }
   0xb   :  { %p71_p6 = por %p70_p5, %p69_p4 }
   0xd   :  { %p72_p7 = pnand %p71_p6, %p65_p3 }
   0xf   :  { %75 = shalt.err (!%p72_p7)
}
  0x10   :  { %19 = dma.hbm_to_vmem [thread:$0]  %s146_s0, 256, %s17_s10, [#allocation4]  }
  0x11   :  { %98 = dma.done.wait [#allocation4], 256  }
  0x12   :  { %99 = vsyncadd [#allocation4], 4294967040  ;;  %v25_v0 = vld [vmem:[#allocation3] sm:$0xff]  ;;  %v26_v1 = vld [vmem:[#allocation3 + $0x8] sm:$0xff]  ;;  %v31_v3 = vstv %s147_s1  ;;  %s103_s23 = smov [#allocation6]  }
  0x13   :  { %v27_v2 = vmax.f32 %v25_v0, %v26_v1  ;;  %s43_s24 = sshll.u32 %s103_s23, 4  ;;  %s44_s24 = int_to_ptr.vmem [resolvable:$true] %s43_s24 }
  0x14   :  { %s76_s0 = scalar_lea.vmem %s44_s24, 256  ;;  %p81_p9 = scmp.lt.s32.totalorder %s44_s24, %s44_s24 }
  0x15   :  { %28 = vmax.xlane.f32.xlu0 %v27_v2  ;;  %p77_p8 = scmp.ne.s32.totalorder %s44_s24, %s76_s0  ;;  %p82_p10 = scmp.lt.s32.totalorder %s76_s0, %s76_s0 }
  0x17   :  { %p83_p11 = por %p82_p10, %p81_p9 }
  0x19   :  { %p84_p12 = pnand %p83_p11, %p77_p8 }
  0xa2   :  { %v29_v4 = vpop.xlane.xlu0 %28 }
  0xa3   :  { %v32_v5 = vmul.f32 %v31_v3, %v29_v4 }
  0xa5   :  { %v33_v6 = vmin.f32 %v25_v0, %v32_v5  ;;  %v34_v7 = vmin.f32 %v26_v1, %v32_v5 }
  0xa7   :  { %35 = vst [vmem:[#allocation6] sm:$0xff] %v33_v6  ;;  %36 = vst [vmem:[#allocation6 + $0x8] sm:$0xff] %v34_v7 }
  0xa8   :  { %87 = shalt.err (!%p84_p12)
}
  0xa9   :  { %s88_s1 = scalar_lea.hbm %s148_s2, 256 }
  0xaa   :  { %p89_p13 = scmp.ne.s32.totalorder %s148_s2, %s88_s1  ;;  %p92_p0 = scmp.lt.u32.totalorder %s88_s1, %s148_s2 }
  0xac   :  { %p94_p1 = pnand %p92_p0, %p89_p13 }
  0xae   :  { %97 = shalt.err (!%p94_p1)
}
  0xaf   :  { %46 = dma.vmem_to_hbm [thread:$0]  %s44_s24, 256, %s148_s2, [#allocation5]  }
  0xb0   :  { %100 = dma.done.wait [#allocation5], 256  }
  0xb1   :  { %101 = vsyncadd [#allocation5], 4294967040 }
  0xb2   :  { %50 = vsyncpa [#allocation4], 1 }
  0xb3   :  { %51 = vsyncpa [#allocation5], 1 }

</bundles_post_ra>
